<compile_context>
chip_gen: v7x
topology: tpu7x:2x2x1
jax: 0.10.0
libtpu: 0.0.40
codegen_flags: <defaults>
</compile_context>

<pallas_src>
import functools

import jax
import jax.numpy as jnp
import numpy as np
from jax.experimental import pallas as pl
from jax.experimental.pallas import tpu as pltpu


# ----------------------------------------------------------------------------
# Mask construction (sequential input order), same math as create_masks().
# ----------------------------------------------------------------------------
def create_masks_sequential(input_size, hidden_size, n_hidden):
    degrees = [np.arange(input_size)]
    for _ in range(n_hidden + 1):
        degrees.append(np.arange(hidden_size) % (input_size - 1))
    # NOTE: matches torch's `arange(D) % D - 1` == arange(D) - 1 (operator precedence).
    degrees.append(np.arange(input_size) % input_size - 1)
    masks = []
    for d0, d1 in zip(degrees[:-1], degrees[1:]):
        masks.append((d1[:, None] >= d0[None, :]).astype(np.float32))
    return masks, degrees[0]


# ----------------------------------------------------------------------------
# Host-side parameter preparation (mask application, transpose, fusion).
# PyTorch convention in:  W0 [H, D], Wc [H, DC] (or None), b0 [H],
#                         mid_wb list of (W [H, H], b [H]), Wf [2D, H], bf [2D].
# ----------------------------------------------------------------------------
def prepare_made_params(W0, Wc, b0, mid_wb, Wf, bf, masks, *, use_bf16=False):
    wdt = jnp.bfloat16 if use_bf16 else jnp.float32

    w0_masked_t = (W0 * masks[0]).T                      # [D, H]
    if Wc is not None:
        w0_stack = jnp.concatenate([w0_masked_t, Wc.T], axis=0)   # [D+DC, H]
    else:
        w0_stack = w0_masked_t                            # [D, H]

    mids = tuple(
        ((W * masks[1 + i]).T.astype(wdt), b.reshape(1, -1).astype(jnp.float32))
        for i, (W, b) in enumerate(mid_wb)
    )

    mask_f = jnp.tile(masks[-1], (2, 1))                  # [2D, H]
    wf = (Wf * mask_f).T                                  # [H, 2D]  (mu | loga)

    return (w0_stack.astype(wdt),
            b0.reshape(1, -1).astype(jnp.float32),
            mids,
            wf.astype(wdt),
            bf.reshape(1, -1).astype(jnp.float32))


# ----------------------------------------------------------------------------
# Kernel
# ----------------------------------------------------------------------------
def _make_made_kernel(n_hidden, d_out):
    def kernel(xy_ref, w0_ref, b0_ref, *rest):
        mid = rest[: 2 * n_hidden]
        wf_ref, bf_ref, out_ref = rest[2 * n_hidden:]

        dot_dt = w0_ref.dtype                               # f32 or bf16 (opt-in)
        xy = xy_ref[...]                                     # [TB, D(+DC)] f32

        # fused layer 0: one dot over the stacked [x|y] input
        h = jnp.dot(xy.astype(dot_dt), w0_ref[...],
                    preferred_element_type=jnp.float32) + b0_ref[...]     # [TB, H]

        # middle masked layers: ReLU -> linear (f32 accumulation)
        for i in range(n_hidden):
            w = mid[2 * i]
            b = mid[2 * i + 1]
            h = jnp.dot(jnp.maximum(h, 0.0).astype(dot_dt), w[...],
                        preferred_element_type=jnp.float32) + b[...]      # [TB, H]

        # fused final layer: single [H, 2D] dot, split mu/loga with a lane slice
        h = jnp.maximum(h, 0.0)
        out = jnp.dot(h.astype(dot_dt), wf_ref[...],
                      preferred_element_type=jnp.float32) + bf_ref[...]   # [TB, 2D]
        m = out[:, :d_out]
        loga = out[:, d_out:]

        x = xy[:, :d_out]                                    # first D lanes = x
        u = (x - m) * jnp.exp(-loga)

        # single lane-dense output slab: [u | -loga]
        out_ref[...] = jnp.concatenate([u, -loga], axis=-1)

    return kernel


# ----------------------------------------------------------------------------
# Tile selection
# ----------------------------------------------------------------------------
def _pick_batch_tile(B, tb_max):
    """Return (tile, padded_B). Prefer a multiple-of-8 tile that divides B (so
    no HBM pad round-trip) and, when B is large enough, >= 2 grid tiles so both
    v7x TensorCores get work; fall back to padding only if no divisor exists."""
    if B <= 8:
        return B, B                                  # single full-extent block
    cap = min(tb_max, B)
    if B >= 16:                                      # leave room for >= 2 tiles
        cap = min(cap, max(8, ((B + 1) // 2) // 8 * 8))
    cap = max(8, (cap // 8) * 8)
    t = cap
    while t >= 8:                                    # largest mult-of-8 divisor
        if B % t == 0:
            return t, B
        t -= 8
    bp = pl.cdiv(B, cap) * cap                       # fallback: pad
    return cap, bp


# ----------------------------------------------------------------------------
# Wrapper
# ----------------------------------------------------------------------------
@functools.partial(jax.jit, static_argnames=("tb",))
def made_forward(x, y, w0_stack, b0, mids, wf, bf, *, tb=2048):
    """MADE.forward: returns (u, log_abs_det_jacobian), each [B, D].

    Parameters must come from prepare_made_params(); `y` may be None
    (unconditional MADE), in which case w0_stack is just [D, H]."""
    B, D_in = x.shape
    D = wf.shape[1] // 2
    H = w0_stack.shape[1]
    n_hidden = len(mids)

    # fused [x | y] input (per review: single K = D+DC matmul on layer 0)
    xy = x if y is None else jnp.concatenate([x, y], axis=-1)
    Din = xy.shape[1]

    tile, Bp = _pick_batch_tile(B, tb)
    n_tiles = Bp // tile
    if Bp != B:                                       # rare fallback path
        xy = jnp.pad(xy, ((0, Bp - B), (0, 0)))

    def resident(arr):
        # constant block index -> DMA'd once, VMEM-resident across grid steps
        return pl.BlockSpec(arr.shape, lambda i: (0, 0))

    args = [xy, w0_stack, b0]
    in_specs = [pl.BlockSpec((tile, Din), lambda i: (i, 0)),
                resident(w0_stack), resident(b0)]
    for (w, b) in mids:
        args += [w, b]
        in_specs += [resident(w), resident(b)]
    args += [wf, bf]
    in_specs += [resident(wf), resident(bf)]

    weight_bytes = sum(int(a.size) * a.dtype.itemsize for a in args[1:])
    flops = (2 * Bp * Din * H
             + n_hidden * 2 * Bp * H * H
             + 2 * Bp * H * (2 * D)
             + 4 * Bp * D)
    cost = pl.CostEstimate(
        flops=int(flops),
        transcendentals=int(Bp * D),
        bytes_accessed=int(4 * Bp * (Din + 2 * D) + weight_bytes),
    )

    # Per-tile footprint: in/out activation tiles (double-buffered) + resident
    # weights + hidden activations.  Clamp <= 48 MiB (v7x has 64 MiB physical).
    act_tile_bytes = 4 * tile * (Din + 2 * D + H)
    vmem_limit = int(min(48 << 20, max(16 << 20,
                                       4 * act_tile_bytes + 2 * weight_bytes + (2 << 20))))

    out = pl.pallas_call(
        _make_made_kernel(n_hidden, D),
        grid=(n_tiles,),
        in_specs=in_specs,
        out_specs=pl.BlockSpec((tile, 2 * D), lambda i: (i, 0)),
        out_shape=jax.ShapeDtypeStruct((Bp, 2 * D), jnp.float32),
        compiler_params=pltpu.CompilerParams(
            dimension_semantics=("parallel",),        # megacore sharding on v7x
            vmem_limit_bytes=vmem_limit,
        ),
        cost_estimate=cost,
    )(*args)

    u = out[:B, :D]
    neg_loga = out[:B, D:]
    return u, neg_loga


# ----------------------------------------------------------------------------
# Pure-JAX reference (same prepared parameters).
# ----------------------------------------------------------------------------
def made_forward_ref(x, y, w0_stack, b0, mids, wf, bf):
    xy = x if y is None else jnp.concatenate([x, y], axis=-1)
    h = xy.astype(jnp.float32) @ w0_stack.astype(jnp.float32) + b0
    for (w, b) in mids:
        h = jnp.maximum(h, 0.0) @ w.astype(jnp.float32) + b
    h = jnp.maximum(h, 0.0)
    out = h @ wf.astype(jnp.float32) + bf
    D = wf.shape[1] // 2
    m, loga = out[:, :D], out[:, D:]
    return (x - m) * jnp.exp(-loga), -loga


# ----------------------------------------------------------------------------
# Demo / self-test
# ----------------------------------------------------------------------------
if __name__ == "__main__":
    # Small MADE config: input_size=8, hidden_size=32, n_hidden=2, cond=4.
    B, D, DC, H, N_HIDDEN = 128, 8, 4, 32, 2

    masks_np, _input_degrees = create_masks_sequential(D, H, N_HIDDEN)
    masks = [jnp.asarray(m) for m in masks_np]

    key = jax.random.PRNGKey(0)
    ks = jax.random.split(key, 8 + 2 * N_HIDDEN)

    x = jax.random.normal(ks[0], (B, D), dtype=jnp.float32)
    y = jax.random.normal(ks[1], (B, DC), dtype=jnp.float32)

    # Synthetic parameters in PyTorch [out, in] convention.
    W0 = 0.1 * jax.random.normal(ks[2], (H, D), dtype=jnp.float32)
    Wc = 0.1 * jax.random.normal(ks[3], (H, DC), dtype=jnp.float32)
    b0 = 0.01 * jax.random.normal(ks[4], (H,), dtype=jnp.float32)
    mid_wb = []
    for li in range(N_HIDDEN):
        Wm = 0.1 * jax.random.normal(ks[5 + 2 * li], (H, H), dtype=jnp.float32)
        bm = 0.01 * jax.random.normal(ks[6 + 2 * li], (H,), dtype=jnp.float32)
        mid_wb.append((Wm, bm))
    Wf = 0.1 * jax.random.normal(ks[5 + 2 * N_HIDDEN], (2 * D, H), dtype=jnp.float32)
    bfv = 0.01 * jax.random.normal(ks[6 + 2 * N_HIDDEN], (2 * D,), dtype=jnp.float32)

    # --- conditional path, f32 (tight tolerance) ------------------------------
    params = prepare_made_params(W0, Wc, b0, mid_wb, Wf, bfv, masks)
    u, logdet = made_forward(x, y, *params, tb=2048)
    jax.block_until_ready((u, logdet))
    u_ref, ld_ref = made_forward_ref(x, y, *params)
    assert u.shape == (B, D) and logdet.shape == (B, D)
    assert jnp.allclose(u, u_ref, atol=1e-4, rtol=1e-4)
    assert jnp.allclose(logdet, ld_ref, atol=1e-4, rtol=1e-4)

    # --- unconditional path (y=None), f32 -------------------------------------
    params_nc = prepare_made_params(W0, None, b0, mid_wb, Wf, bfv, masks)
    u2, ld2 = made_forward(x, None, *params_nc, tb=64)
    jax.block_until_ready((u2, ld2))
    u2_ref, ld2_ref = made_forward_ref(x, None, *params_nc)
    assert jnp.allclose(u2, u2_ref, atol=1e-4, rtol=1e-4)
    assert jnp.allclose(ld2, ld2_ref, atol=1e-4, rtol=1e-4)

    # --- opt-in bf16 MXU operands (looser tolerance, per review) ---------------
    params_bf = prepare_made_params(W0, Wc, b0, mid_wb, Wf, bfv, masks, use_bf16=True)
    u3, ld3 = made_forward(x, y, *params_bf, tb=2048)
    jax.block_until_ready((u3, ld3))
    assert jnp.all(jnp.isfinite(u3)) and jnp.all(jnp.isfinite(ld3))
    assert jnp.allclose(u3, u_ref, atol=1e-1, rtol=1e-1)
    assert jnp.allclose(ld3, ld_ref, atol=1e-1, rtol=1e-1)

    print("KERNEL_OK")
</pallas_src>

<mosaic_0001>
module attributes {stable_mosaic.version = 11 : i64} {
  func.func @kernel(%arg0: i32, %arg1: memref<64x12xf32, #tpu.memory_space<vmem>>, %arg2: memref<12x32xf32, #tpu.memory_space<vmem>>, %arg3: memref<1x32xf32, #tpu.memory_space<vmem>>, %arg4: memref<32x32xf32, #tpu.memory_space<vmem>>, %arg5: memref<1x32xf32, #tpu.memory_space<vmem>>, %arg6: memref<32x32xf32, #tpu.memory_space<vmem>>, %arg7: memref<1x32xf32, #tpu.memory_space<vmem>>, %arg8: memref<32x16xf32, #tpu.memory_space<vmem>>, %arg9: memref<1x16xf32, #tpu.memory_space<vmem>>, %arg10: memref<64x16xf32, #tpu.memory_space<vmem>>) attributes {dimension_semantics = [#tpu.dimension_semantics<parallel>], iteration_bounds = array<i64: 2>, scalar_prefetch = 0 : i64, scratch_operands = 0 : i64, tpu.core_type = #tpu.core_type<tc>, window_params = [{transform_indices = @transform_0, window_bounds = array<i64: 64, 12>}, {pipeline_mode = #tpu.pipeline_mode<synchronous>, transform_indices = @transform_1, window_bounds = array<i64: 12, 32>}, {pipeline_mode = #tpu.pipeline_mode<synchronous>, transform_indices = @transform_2, window_bounds = array<i64: 1, 32>}, {pipeline_mode = #tpu.pipeline_mode<synchronous>, transform_indices = @transform_3, window_bounds = array<i64: 32, 32>}, {pipeline_mode = #tpu.pipeline_mode<synchronous>, transform_indices = @transform_4, window_bounds = array<i64: 1, 32>}, {pipeline_mode = #tpu.pipeline_mode<synchronous>, transform_indices = @transform_5, window_bounds = array<i64: 32, 32>}, {pipeline_mode = #tpu.pipeline_mode<synchronous>, transform_indices = @transform_6, window_bounds = array<i64: 1, 32>}, {pipeline_mode = #tpu.pipeline_mode<synchronous>, transform_indices = @transform_7, window_bounds = array<i64: 32, 16>}, {pipeline_mode = #tpu.pipeline_mode<synchronous>, transform_indices = @transform_8, window_bounds = array<i64: 1, 16>}, {transform_indices = @transform_9, window_bounds = array<i64: 64, 16>}]} {
    %c0 = arith.constant 0 : index
    %c0_0 = arith.constant 0 : index
    %0 = vector.load %arg1[%c0, %c0_0] : memref<64x12xf32, #tpu.memory_space<vmem>>, vector<64x12xf32>
    %c0_1 = arith.constant 0 : index
    %c0_2 = arith.constant 0 : index
    %1 = vector.load %arg2[%c0_1, %c0_2] : memref<12x32xf32, #tpu.memory_space<vmem>>, vector<12x32xf32>
    %cst = arith.constant dense<0.000000e+00> : vector<64x32xf32>
    %2 = tpu.matmul %0, %1, %cst {dimension_numbers = #tpu.dot_dimension_numbers<[1], [0], [0], [1], [0, 0, 1, 1], [], []>} : vector<64x12xf32>, vector<12x32xf32>, vector<64x32xf32> -> vector<64x32xf32>
    %c0_3 = arith.constant 0 : index
    %c0_4 = arith.constant 0 : index
    %3 = vector.load %arg3[%c0_3, %c0_4] : memref<1x32xf32, #tpu.memory_space<vmem>>, vector<1x32xf32>
    %4 = vector.broadcast %3 : vector<1x32xf32> to vector<64x32xf32>
    %5 = arith.addf %2, %4 : vector<64x32xf32>
    %cst_5 = arith.constant 0.000000e+00 : f32
    %6 = vector.broadcast %cst_5 : f32 to vector<64x32xf32>
    %7 = arith.maximumf %5, %6 : vector<64x32xf32>
    %c0_6 = arith.constant 0 : index
    %c0_7 = arith.constant 0 : index
    %8 = vector.load %arg4[%c0_6, %c0_7] : memref<32x32xf32, #tpu.memory_space<vmem>>, vector<32x32xf32>
    %cst_8 = arith.constant dense<0.000000e+00> : vector<64x32xf32>
    %9 = tpu.matmul %7, %8, %cst_8 {dimension_numbers = #tpu.dot_dimension_numbers<[1], [0], [0], [1], [0, 0, 1, 1], [], []>} : vector<64x32xf32>, vector<32x32xf32>, vector<64x32xf32> -> vector<64x32xf32>
    %c0_9 = arith.constant 0 : index
    %c0_10 = arith.constant 0 : index
    %10 = vector.load %arg5[%c0_9, %c0_10] : memref<1x32xf32, #tpu.memory_space<vmem>>, vector<1x32xf32>
    %11 = vector.broadcast %10 : vector<1x32xf32> to vector<64x32xf32>
    %12 = arith.addf %9, %11 : vector<64x32xf32>
    %cst_11 = arith.constant 0.000000e+00 : f32
    %13 = vector.broadcast %cst_11 : f32 to vector<64x32xf32>
    %14 = arith.maximumf %12, %13 : vector<64x32xf32>
    %c0_12 = arith.constant 0 : index
    %c0_13 = arith.constant 0 : index
    %15 = vector.load %arg6[%c0_12, %c0_13] : memref<32x32xf32, #tpu.memory_space<vmem>>, vector<32x32xf32>
    %cst_14 = arith.constant dense<0.000000e+00> : vector<64x32xf32>
    %16 = tpu.matmul %14, %15, %cst_14 {dimension_numbers = #tpu.dot_dimension_numbers<[1], [0], [0], [1], [0, 0, 1, 1], [], []>} : vector<64x32xf32>, vector<32x32xf32>, vector<64x32xf32> -> vector<64x32xf32>
    %c0_15 = arith.constant 0 : index
    %c0_16 = arith.constant 0 : index
    %17 = vector.load %arg7[%c0_15, %c0_16] : memref<1x32xf32, #tpu.memory_space<vmem>>, vector<1x32xf32>
    %18 = vector.broadcast %17 : vector<1x32xf32> to vector<64x32xf32>
    %19 = arith.addf %16, %18 : vector<64x32xf32>
    %cst_17 = arith.constant 0.000000e+00 : f32
    %20 = vector.broadcast %cst_17 : f32 to vector<64x32xf32>
    %21 = arith.maximumf %19, %20 : vector<64x32xf32>
    %c0_18 = arith.constant 0 : index
    %c0_19 = arith.constant 0 : index
    %22 = vector.load %arg8[%c0_18, %c0_19] : memref<32x16xf32, #tpu.memory_space<vmem>>, vector<32x16xf32>
    %cst_20 = arith.constant dense<0.000000e+00> : vector<64x16xf32>
    %23 = tpu.matmul %21, %22, %cst_20 {dimension_numbers = #tpu.dot_dimension_numbers<[1], [0], [0], [1], [0, 0, 1, 1], [], []>} : vector<64x32xf32>, vector<32x16xf32>, vector<64x16xf32> -> vector<64x16xf32>
    %c0_21 = arith.constant 0 : index
    %c0_22 = arith.constant 0 : index
    %24 = vector.load %arg9[%c0_21, %c0_22] : memref<1x16xf32, #tpu.memory_space<vmem>>, vector<1x16xf32>
    %25 = vector.broadcast %24 : vector<1x16xf32> to vector<64x16xf32>
    %26 = arith.addf %23, %25 : vector<64x16xf32>
    %27 = vector.extract_strided_slice %26 {offsets = [0, 0], sizes = [64, 8], strides = [1, 1]} : vector<64x16xf32> to vector<64x8xf32>
    %28 = vector.extract_strided_slice %26 {offsets = [0, 8], sizes = [64, 8], strides = [1, 1]} : vector<64x16xf32> to vector<64x8xf32>
    %29 = vector.extract_strided_slice %0 {offsets = [0, 0], sizes = [64, 8], strides = [1, 1]} : vector<64x12xf32> to vector<64x8xf32>
    %30 = arith.subf %29, %27 : vector<64x8xf32>
    %cst_23 = arith.constant 0.000000e+00 : f32
    %31 = vector.broadcast %cst_23 : f32 to vector<64x8xf32>
    %32 = arith.subf %31, %28 : vector<64x8xf32>
    %33 = math.exp %32 : vector<64x8xf32>
    %34 = arith.mulf %30, %33 : vector<64x8xf32>
    %cst_24 = arith.constant 0.000000e+00 : f32
    %35 = vector.broadcast %cst_24 : f32 to vector<64x8xf32>
    %36 = arith.subf %35, %28 : vector<64x8xf32>
    %37 = tpu.concatenate %34, %36 in 1 : vector<64x8xf32>, vector<64x8xf32> -> vector<64x16xf32>
    %c0_25 = arith.constant 0 : index
    %c0_26 = arith.constant 0 : index
    %38 = vector.load %arg10[%c0_25, %c0_26] : memref<64x16xf32, #tpu.memory_space<vmem>>, vector<64x16xf32>
    tpu.vector_store %arg10[%c0_25, %c0_26], %37 {strides = array<i32>} : memref<64x16xf32, #tpu.memory_space<vmem>>, vector<64x16xf32>,
    return
  }
  func.func @transform_0(%arg0: i32) -> (i32, i32) {
    %c0_i32 = arith.constant 0 : i32
    %c0_i32_0 = arith.constant 0 : i32
    return %arg0, %c0_i32 : i32, i32
  }
  func.func @transform_1(%arg0: i32) -> (i32, i32) {
    %c0_i32 = arith.constant 0 : i32
    %c0_i32_0 = arith.constant 0 : i32
    %c0_i32_1 = arith.constant 0 : i32
    return %c0_i32, %c0_i32_0 : i32, i32
  }
  func.func @transform_2(%arg0: i32) -> (i32, i32) {
    %c0_i32 = arith.constant 0 : i32
    %c0_i32_0 = arith.constant 0 : i32
    %c0_i32_1 = arith.constant 0 : i32
    return %c0_i32, %c0_i32_0 : i32, i32
  }
  func.func @transform_3(%arg0: i32) -> (i32, i32) {
    %c0_i32 = arith.constant 0 : i32
    %c0_i32_0 = arith.constant 0 : i32
    %c0_i32_1 = arith.constant 0 : i32
    return %c0_i32, %c0_i32_0 : i32, i32
  }
  func.func @transform_4(%arg0: i32) -> (i32, i32) {
    %c0_i32 = arith.constant 0 : i32
    %c0_i32_0 = arith.constant 0 : i32
    %c0_i32_1 = arith.constant 0 : i32
    return %c0_i32, %c0_i32_0 : i32, i32
  }
  func.func @transform_5(%arg0: i32) -> (i32, i32) {
    %c0_i32 = arith.constant 0 : i32
    %c0_i32_0 = arith.constant 0 : i32
    %c0_i32_1 = arith.constant 0 : i32
    return %c0_i32, %c0_i32_0 : i32, i32
  }
  func.func @transform_6(%arg0: i32) -> (i32, i32) {
    %c0_i32 = arith.constant 0 : i32
    %c0_i32_0 = arith.constant 0 : i32
    %c0_i32_1 = arith.constant 0 : i32
    return %c0_i32, %c0_i32_0 : i32, i32
  }
  func.func @transform_7(%arg0: i32) -> (i32, i32) {
    %c0_i32 = arith.constant 0 : i32
    %c0_i32_0 = arith.constant 0 : i32
    %c0_i32_1 = arith.constant 0 : i32
    return %c0_i32, %c0_i32_0 : i32, i32
  }
  func.func @transform_8(%arg0: i32) -> (i32, i32) {
    %c0_i32 = arith.constant 0 : i32
    %c0_i32_0 = arith.constant 0 : i32
    %c0_i32_1 = arith.constant 0 : i32
    return %c0_i32, %c0_i32_0 : i32, i32
  }
  func.func @transform_9(%arg0: i32) -> (i32, i32) {
    %c0_i32 = arith.constant 0 : i32
    %c0_i32_0 = arith.constant 0 : i32
    return %arg0, %c0_i32 : i32, i32
  }
}

</mosaic_0001>

<bundles_post_ra>
// kernel: made_forward.1
= control target key start
LH: loop header
LB: loop body
LE: loop exit
PB: predicated region body
PF: predicated region fallthrough
CT: control target
= control target key end

     0   :  { %s1364_s30 = smov 0   ;;  %s1580_s0 = inlined_call_operand.vmem [shape: f32[128,12], index: 0, kind: input, shape index: {}]   ;;  %s1581_s1 = inlined_call_operand.vmem [shape: f32[12,32], index: 1, kind: input, shape index: {}]   ;;  %s1582_s2 = inlined_call_operand.vmem [shape: f32[1,32], index: 2, kind: input, shape index: {}]   ;;  %s1583_s3 = inlined_call_operand.vmem [shape: f32[32,32], index: 3, kind: input, shape index: {}]   ;;  %s1584_s4 = inlined_call_operand.vmem [shape: f32[1,32], index: 4, kind: input, shape index: {}]   ;;  %s1585_s5 = inlined_call_operand.vmem [shape: f32[32,32], index: 5, kind: input, shape index: {}]   ;;  %s1586_s6 = inlined_call_operand.vmem [shape: f32[1,32], index: 6, kind: input, shape index: {}]   ;;  %s1587_s7 = inlined_call_operand.vmem [shape: f32[32,16], index: 7, kind: input, shape index: {}]   ;;  %s1588_s8 = inlined_call_operand.vmem [shape: f32[1,16], index: 8, kind: input, shape index: {}]   ;;  %s1589_s9 = inlined_call_operand.vmem [shape: f32[128,16], index: 9, kind: output, shape index: {}]  }
   0x1 LB: > { %s1078_s10 = sadd.s32 4294967295, %s1310_s30   ;;  %p1082_p0 = scmp.ge.s32.totalorder %s1310_s30, 1  ;;  %s1310_s30 = sphi %s1364_s30, %s19_s30  }
   0x2   : > { %p288_p1 = scmp.lt.s32.totalorder %s1310_s30, 3 }
   0x4   : > { %p289_p2 = pnand %p1082_p0, %p288_p1 }
   0x5   : > { %v344_v0 = vld [vmem:[%s1581_s1] sm:$0xff] (!%p289_p2)  ;;  %v345_v1 = vld [vmem:[%s1581_s1 + $0x8] sm:$0xf] (!%p289_p2)  ;;  %vm378_vm0 = vcmask (!%p289_p2), 1043456   ;;  %s1083_s15 = sshll.u32 (!%p289_p2), %s1078_s10, 3  ;;  %vm1312_vm1 = vmmov (!%p289_p2), 1  }
   0x6   : > { %292 = sbr.rel (%p289_p2) target bundleno = 1036 (0x40c), region = 56  ;;  %v1248_v2 = vpack.c.bf16 (!%p289_p2), %v345_v1, %v344_v0  ;;  %vm1249_vm2 = vmpackc.low (!%p289_p2), %vm378_vm0, %vm1312_vm1  ;;  %p325_p3 = scmp.lt.s32.totalorder (!%p289_p2), %s1083_s15, 15  ;;  %v495_v3 = vld [vmem:[%s1583_s3] sm:$0xff] (!%p289_p2)  ;;  %v496_v4 = vld [vmem:[%s1583_s3 + $0x8] sm:$0xff] (!%p289_p2)  ;;  %vm353_vm3 = vcmask (!%p289_p2), 97280   ;;  %vm506_vm4 = vcmask (!%p289_p2), 261120  }
   0x7   : > { %v1254_v5 = vpack.c.bf16 (!%p289_p2), %v496_v4, %v495_v3  ;;  %v497_v14 = vld [vmem:[%s1583_s3 + $0x10] sm:$0xff] (!%p289_p2)  ;;  %v498_v15 = vld [vmem:[%s1583_s3 + $0x18] sm:$0xff] (!%p289_p2)  ;;  %v644_v17 = vld [vmem:[%s1585_s5] sm:$0xff] (!%p289_p2)  ;;  %s1313_s14 = smov (!%p289_p2), 120   ;;  %vm1004_vm5 = vcmask (!%p289_p2), 64512   ;;  %vm1013_vm6 = vcmask (!%p289_p2), 130048  }
   0x8   : > { %1250 = vmatprep.subr.msk.bf16.mxu0 (!%p289_p2), %vm1249_vm2, %v1248_v2  ;;  %v1258_v16 = vpack.c.bf16 (!%p289_p2), %v498_v15, %v497_v14  ;;  %v645_v18 = vld [vmem:[%s1585_s5 + $0x8] sm:$0xff] (!%p289_p2)  ;;  %v646_v19 = vld [vmem:[%s1585_s5 + $0x10] sm:$0xff] (!%p289_p2)  ;;  %v647_v21 = vld [vmem:[%s1585_s5 + $0x18] sm:$0xff] (!%p289_p2) }
   0x9   : > { %1253 = vmatpush3.bf16.msk.msra.mxu0 (!%p289_p2), %vm1249_vm2, %v1248_v2  ;;  %1255 = vmatprep.subr.bf16.mxu1 (!%p289_p2), %v1254_v5  ;;  %v1262_v20 = vpack.c.bf16 (!%p289_p2), %v645_v18, %v644_v17  ;;  %v1266_v22 = vpack.c.bf16 (!%p289_p2), %v647_v21, %v646_v19  ;;  %v1087_v23 = vld [vmem:[%s1582_s2] ss:$0 sm:$0xff] (!%p289_p2)  ;;  %v793_v49 = vld [vmem:[%s1587_s7 + $0x8] sm:$0xff] (!%p289_p2)  ;;  %v794_v50 = vld [vmem:[%s1587_s7 + $0x10] sm:$0xff] (!%p289_p2) }
   0xa   : > { %1257 = vmatpush3.bf16.msra.mxu1 (!%p289_p2), %v1254_v5  ;;  %v792_v48 = vld [vmem:[%s1587_s7] sm:$0xff] (!%p289_p2)  ;;  %v795_v52 = vld [vmem:[%s1587_s7 + $0x18] sm:$0xff] (!%p289_p2) }
   0xb   : > { %1259 = vmatprep.subr.bf16.mxu1 (!%p289_p2), %v1258_v16  ;;  %1263 = vmatprep.subr.bf16.mxu0 (!%p289_p2), %v1262_v20  ;;  %v1270_v51 = vpack.c.bf16 (!%p289_p2), %v793_v49, %v792_v48  ;;  %v1274_v53 = vpack.c.bf16 (!%p289_p2), %v795_v52, %v794_v50  ;;  %v1097_v54 = vld [vmem:[%s1584_s4] ss:$0 sm:$0xff] (!%p289_p2) }
   0xc   : > { %v1115_v48 = vld [vmem:[%s1588_s8] ss:$0 sm:$0xff] (!%p289_p2) }
   0xd   : > { %s1591_s15 = smov (!%p325_p3, %s1083_s15), 15 }
   0xe   : > { %s1084_s20 = sshll.u32 %s1591_s15, 3  ;;  %1261 = vmatpush3.bf16.msra.mxu1 %v1258_v16 }
   0xf   : > { %s328_s23 = scalar_lea.vmem %s1580_s0, %s1084_s20  ;;  %1271 = vmatprep.subr.bf16.mxu1 %v1270_v51  ;;  %s1529_s18 = scalar_lea.vmem %s1589_s9, %s1084_s20 }
  0x10   : > { %v1392_v6 = vld [vmem:[%s328_s23] sm:$0xff]  ;;  %v1394_v7 = vld [vmem:[%s328_s23 + $0x8] sm:$0xff]  ;;  %v1396_v8 = vld [vmem:[%s328_s23 + $0x10] sm:$0xff] }
  0x11   : > { %1176 = vmatprep.mubr.msk.f32.mxu0 %vm353_vm3, %v1392_v6  ;;  %v1404_v9 = vld [vmem:[%s328_s23 + $0x18] sm:$0xff]  ;;  %v1406_v10 = vld [vmem:[%s328_s23 + $0x20] sm:$0xff]  ;;  %v1412_v11 = vld [vmem:[%s328_s23 + $0x28] sm:$0xff] }
  0x12   : > { %1177 = vmatmul.mubr.msk.f32.vlgmr.msra.gmra.mrb[0].mxu0 %vm353_vm3, %v1394_v7  ;;  %v1414_v12 = vld [vmem:[%s328_s23 + $0x30] sm:$0xff]  ;;  %v1420_v13 = vld [vmem:[%s328_s23 + $0x38] sm:$0xff] }
  0x13   : > { %1179 = vmatprep.mubr.msk.f32.mxu0 %vm353_vm3, %v1396_v8  ;;  %1265 = vmatpush3.bf16.msra.mxu0 %v1262_v20 }
  0x14   : > { %1267 = vmatprep.subr.bf16.mxu0 %v1266_v22 }
  0x16   : > { %1180 = vmatmul.mubr.msk.f32.gmra.mrb[2].mxu0 %vm353_vm3, %v1404_v9 }
  0x17   : > { %1182 = vmatprep.mubr.msk.f32.mxu0 %vm353_vm3, %v1406_v10  ;;  %1269 = vmatpush3.bf16.msra.mxu0 %v1266_v22 }
  0x1a   : > { %1183 = vmatmul.mubr.msk.f32.gmra.mrb[4].mxu0 %vm353_vm3, %v1412_v11 }
  0x1b   : > { %1185 = vmatprep.mubr.msk.f32.mxu0 %vm353_vm3, %v1414_v12 }
  0x1e   : > { %1186 = vmatmul.mubr.msk.f32.gmra.mrb[6].mxu0 %vm353_vm3, %v1420_v13 }
  0xe5   : > { %v1178_v24 = vpop.f32.mrb[0].mxu0 }
  0xe6   : > { %v454_v25 = vadd.f32 %v1178_v24, %v1087_v23  ;;  %v448_v26 = vpop.f32.mrb[1].mxu0 }
  0xe7   : > { %v449_v27 = vadd.f32 %v1087_v23, %v448_v26 }
  0xe8   : > { %v488_v30 = vmax.f32 %v454_v25, 0.0 }
  0xe9   : > { %v487_v28 = vmax.f32 %v449_v27, 0.0  ;;  %v1181_v29 = vpop.f32.mrb[2].mxu0 }
  0xea   : > { %v464_v31 = vadd.f32 %v1181_v29, %v1087_v23  ;;  %v458_v32 = vpop.f32.mrb[3].mxu0 }
  0xeb   : > { %v459_v33 = vadd.f32 %v1087_v23, %v458_v32  ;;  %1196 = vmatprep.mubr.msk.f32.mxu1 %vm506_vm4, %v487_v28 }
  0xec   : > { %1197 = vmatmul.mubr.msk.f32.vlgmr.msra.gmra.mrb[0].mxu1 %vm506_vm4, %v488_v30  ;;  %v490_v36 = vmax.f32 %v464_v31, 0.0 }
  0xed   : > { %v489_v34 = vmax.f32 %v459_v33, 0.0  ;;  %v1184_v35 = vpop.f32.mrb[4].mxu0  ;;  %1273 = vmatpush3.bf16.msra.mxu1 %v1270_v51 }
  0xee   : > { %v474_v37 = vadd.f32 %v1184_v35, %v1087_v23  ;;  %v468_v38 = vpop.f32.mrb[5].mxu0  ;;  %1275 = vmatprep.subr.bf16.mxu1 %v1274_v53 }
  0xef   : > { %v469_v39 = vadd.f32 %v1087_v23, %v468_v38  ;;  %1199 = vmatprep.mubr.msk.f32.mxu1 %vm506_vm4, %v489_v34 }
  0xf0   : > { %v492_v40 = vmax.f32 %v474_v37, 0.0  ;;  %1200 = vmatmul.mubr.msk.f32.gmra.mrb[2].mxu1 %vm506_vm4, %v490_v36 }
  0xf1   : > { %v491_v41 = vmax.f32 %v469_v39, 0.0  ;;  %v1187_v42 = vpop.f32.mrb[6].mxu0  ;;  %1277 = vmatpush3.bf16.msra.mxu1 %v1274_v53 }
  0xf2   : > { %v484_v43 = vadd.f32 %v1187_v42, %v1087_v23  ;;  %v478_v44 = vpop.f32.mrb[7].mxu0 }
  0xf3   : > { %v479_v45 = vadd.f32 %v1087_v23, %v478_v44  ;;  %1202 = vmatprep.mubr.msk.f32.mxu1 %vm506_vm4, %v491_v41  ;;  %v1106_v23 = vld [vmem:[%s1586_s6] ss:$0 sm:$0xff] }
  0xf4   : > { %v494_v46 = vmax.f32 %v484_v43, 0.0  ;;  %1203 = vmatmul.mubr.msk.f32.gmra.mrb[4].mxu1 %vm506_vm4, %v492_v40 }
  0xf5   : > { %v493_v47 = vmax.f32 %v479_v45, 0.0 }
  0xf7   : > { %1205 = vmatprep.mubr.msk.f32.mxu1 %vm506_vm4, %v493_v47 }
  0xf8   : > { %1206 = vmatmul.mubr.msk.f32.gmra.mrb[6].mxu1 %vm506_vm4, %v494_v46 }
 0x1bf   : > { %v1198_v55 = vpop.f32.mrb[0].mxu1 }
 0x1c0   : > { %v603_v56 = vadd.f32 %v1198_v55, %v1097_v54  ;;  %v597_v57 = vpop.f32.mrb[1].mxu1 }
 0x1c1   : > { %v598_v58 = vadd.f32 %v1097_v54, %v597_v57 }
 0x1c2   : > { %v637_v61 = vmax.f32 %v603_v56, 0.0 }
 0x1c3   : > { %v636_v59 = vmax.f32 %v598_v58, 0.0  ;;  %v1201_v60 = vpop.f32.mrb[2].mxu1 }
 0x1c4   : > { %v613_v62 = vadd.f32 %v1201_v60, %v1097_v54  ;;  %v607_v63 = vpop.f32.mrb[3].mxu1 }
 0x1c5   : > { %v608_v0 = vadd.f32 %v1097_v54, %v607_v63  ;;  %1216 = vmatprep.mubr.msk.f32.mxu0 %vm506_vm4, %v636_v59 }
 0x1c6   : > { %1217 = vmatmul.mubr.msk.f32.vlgmr.msra.gmra.mrb[8].mxu0 %vm506_vm4, %v637_v61  ;;  %v639_v3 = vmax.f32 %v613_v62, 0.0 }
 0x1c7   : > { %v638_v1 = vmax.f32 %v608_v0, 0.0  ;;  %v1204_v2 = vpop.f32.mrb[4].mxu1 }
 0x1c8   : > { %v623_v4 = vadd.f32 %v1204_v2, %v1097_v54  ;;  %v617_v5 = vpop.f32.mrb[5].mxu1 }
 0x1c9   : > { %v618_v14 = vadd.f32 %v1097_v54, %v617_v5  ;;  %1219 = vmatprep.mubr.msk.f32.mxu0 %vm506_vm4, %v638_v1 }
 0x1ca   : > { %v641_v15 = vmax.f32 %v623_v4, 0.0  ;;  %1220 = vmatmul.mubr.msk.f32.gmra.mrb[10].mxu0 %vm506_vm4, %v639_v3 }
 0x1cb   : > { %v640_v16 = vmax.f32 %v618_v14, 0.0  ;;  %v1207_v17 = vpop.f32.mrb[6].mxu1 }
 0x1cc   : > { %v633_v18 = vadd.f32 %v1207_v17, %v1097_v54  ;;  %v627_v19 = vpop.f32.mrb[7].mxu1 }
 0x1cd   : > { %v628_v20 = vadd.f32 %v1097_v54, %v627_v19  ;;  %1222 = vmatprep.mubr.msk.f32.mxu0 %vm506_vm4, %v640_v16 }
 0x1ce   : > { %v643_v21 = vmax.f32 %v633_v18, 0.0  ;;  %1223 = vmatmul.mubr.msk.f32.gmra.mrb[12].mxu0 %vm506_vm4, %v641_v15 }
 0x1cf   : > { %v642_v22 = vmax.f32 %v628_v20, 0.0 }
 0x1d1   : > { %1225 = vmatprep.mubr.msk.f32.mxu0 %vm506_vm4, %v642_v22 }
 0x1d2   : > { %1226 = vmatmul.mubr.msk.f32.gmra.mrb[14].mxu0 %vm506_vm4, %v643_v21 }
 0x299   : > { %v1218_v24 = vpop.f32.mrb[8].mxu0 }
 0x29a   : > { %v751_v25 = vadd.f32 %v1218_v24, %v1106_v23  ;;  %v745_v26 = vpop.f32.mrb[9].mxu0 }
 0x29b   : > { %v746_v27 = vadd.f32 %v1106_v23, %v745_v26 }
 0x29c   : > { %v785_v30 = vmax.f32 %v751_v25, 0.0 }
 0x29d   : > { %v784_v28 = vmax.f32 %v746_v27, 0.0  ;;  %v1221_v29 = vpop.f32.mrb[10].mxu0 }
 0x29e   : > { %v761_v31 = vadd.f32 %v1221_v29, %v1106_v23  ;;  %v755_v32 = vpop.f32.mrb[11].mxu0 }
 0x29f   : > { %v756_v33 = vadd.f32 %v1106_v23, %v755_v32  ;;  %1236 = vmatprep.mubr.msk.f32.mxu1 %vm506_vm4, %v784_v28 }
 0x2a0   : > { %1237 = vmatmul.mubr.msk.f32.vlgmr.msra.gmra.mrb[8].mxu1 %vm506_vm4, %v785_v30  ;;  %v787_v36 = vmax.f32 %v761_v31, 0.0 }
 0x2a1   : > { %v786_v34 = vmax.f32 %v756_v33, 0.0  ;;  %v1224_v35 = vpop.f32.mrb[12].mxu0 }
 0x2a2   : > { %v771_v37 = vadd.f32 %v1224_v35, %v1106_v23  ;;  %v765_v38 = vpop.f32.mrb[13].mxu0 }
 0x2a3   : > { %v766_v39 = vadd.f32 %v1106_v23, %v765_v38  ;;  %1239 = vmatprep.mubr.msk.f32.mxu1 %vm506_vm4, %v786_v34 }
 0x2a4   : > { %1240 = vmatmul.mubr.msk.f32.gmra.mrb[10].mxu1 %vm506_vm4, %v787_v36  ;;  %v789_v42 = vmax.f32 %v771_v37, 0.0 }
 0x2a5   : > { %v788_v40 = vmax.f32 %v766_v39, 0.0  ;;  %v1227_v41 = vpop.f32.mrb[14].mxu0 }
 0x2a6   : > { %v781_v43 = vadd.f32 %v1227_v41, %v1106_v23  ;;  %v775_v44 = vpop.f32.mrb[15].mxu0 }
 0x2a7   : > { %v776_v45 = vadd.f32 %v1106_v23, %v775_v44  ;;  %1242 = vmatprep.mubr.msk.f32.mxu1 %vm506_vm4, %v788_v40 }
 0x2a8   : > { %1243 = vmatmul.mubr.msk.f32.gmra.mrb[12].mxu1 %vm506_vm4, %v789_v42  ;;  %v791_v47 = vmax.f32 %v781_v43, 0.0 }
 0x2a9   : > { %v790_v46 = vmax.f32 %v776_v45, 0.0 }
 0x2ab   : > { %1245 = vmatprep.mubr.msk.f32.mxu1 %vm506_vm4, %v790_v46 }
 0x2ac   : > { %1246 = vmatmul.mubr.msk.f32.gmra.mrb[14].mxu1 %vm506_vm4, %v791_v47 }
 0x373   : > { %v1238_v49 = vpop.f32.mrb[8].mxu1 }
 0x374   : > { %v1490_v50 = vadd.f32 %v1238_v49, %v1115_v48  ;;  %v893_v51 = vpop.f32.mrb[9].mxu1 }
 0x375   : > { %v1492_v52 = vadd.f32 %v1115_v48, %v893_v51 }
 0x376   : > { %v941_v53 = vsub.f32 0.0, %v1490_v50  ;;  %v933_v33 = vsub.f32 %v1394_v7, %v1490_v50 }
 0x377   : > { %v940_v54 = vsub.f32 0.0, %v1492_v52  ;;  %v1241_v55 = vpop.f32.mrb[10].mxu1  ;;  %v932_v7 = vsub.f32 %v1392_v6, %v1492_v52 }
 0x378   : > { %v950_v56 = vmul.f32 1.442695, %v941_v53  ;;  %v1496_v57 = vadd.f32 %v1241_v55, %v1115_v48  ;;  %v903_v58 = vpop.f32.mrb[11].mxu1 }
 0x379   : > { %v948_v59 = vmul.f32 1.442695, %v940_v54  ;;  %v1500_v60 = vadd.f32 %v1115_v48, %v903_v58 }
 0x37a   : > { %1288 = vpow2.f32 %v950_v56  ;;  %v943_v61 = vsub.f32 0.0, %v1496_v57  ;;  %v935_v37 = vsub.f32 %v1404_v9, %v1496_v57 }
 0x37b   : > { %v942_v62 = vsub.f32 0.0, %v1500_v60  ;;  %v1244_v63 = vpop.f32.mrb[12].mxu1  ;;  %1290 = vpow2.f32 %v948_v59  ;;  %v934_v9 = vsub.f32 %v1396_v8, %v1500_v60 }
 0x37c   : > { %v954_v0 = vmul.f32 1.442695, %v943_v61  ;;  %v1504_v1 = vadd.f32 %v1244_v63, %v1115_v48  ;;  %v913_v2 = vpop.f32.mrb[13].mxu1 }
 0x37d   : > { %v1506_v3 = vadd.f32 %v1115_v48, %v913_v2  ;;  %v952_v4 = vmul.f32 1.442695, %v942_v62 }
 0x37e   : > { %1292 = vpow2.f32 %v954_v0  ;;  %v945_v5 = vsub.f32 0.0, %v1504_v1  ;;  %v937_v8 = vsub.f32 %v1412_v11, %v1504_v1 }
 0x37f   : > { %v944_v14 = vsub.f32 0.0, %v1506_v3  ;;  %v1247_v15 = vpop.f32.mrb[14].mxu1  ;;  %1294 = vpow2.f32 %v952_v4  ;;  %v936_v44 = vsub.f32 %v1406_v10, %v1506_v3 }
 0x380   : > { %v1512_v16 = vadd.f32 %v1247_v15, %v1115_v48  ;;  %v923_v17 = vpop.f32.mrb[15].mxu1  ;;  %v958_v20 = vmul.f32 1.442695, %v945_v5 }
 0x381   : > { %v956_v18 = vmul.f32 1.442695, %v944_v14  ;;  %v1514_v19 = vadd.f32 %v1115_v48, %v923_v17 }
 0x382   : > { %v947_v21 = vsub.f32 0.0, %v1512_v16  ;;  %v939_v11 = vsub.f32 %v1420_v13, %v1512_v16 }
 0x383   : > { %1296 = vpow2.f32 %v956_v18  ;;  %v946_v22 = vsub.f32 0.0, %v1514_v19  ;;  %v938_v10 = vsub.f32 %v1414_v12, %v1514_v19 }
 0x384   : > { %v1289_v23 = vpop.eup %1288  ;;  %1298 = vpow2.f32 %v958_v20  ;;  %v962_v25 = vmul.f32 1.442695, %v947_v21 }
 0x385   : > { %v960_v24 = vmul.f32 1.442695, %v946_v22  ;;  %974 = vrot.lane.b32.xlu0 %v1289_v23, %s1313_s14  ;;  %v1291_v26 = vpop.eup %1290 }
 0x387   : > { %1300 = vpow2.f32 %v960_v24 }
 0x388   : > { %v1293_v27 = vpop.eup %1292  ;;  %1302 = vpow2.f32 %v962_v25 }
 0x389   : > { %978 = vrot.lane.b32.xlu1 %v1293_v27, %s1313_s14  ;;  %972 = vrot.lane.b32.xlu0 %v1291_v26, %s1313_s14  ;;  %v1295_v28 = vpop.eup %1294 }
 0x38d   : > { %v1297_v29 = vpop.eup %1296  ;;  %976 = vrot.lane.b32.xlu1 %v1295_v28, %s1313_s14 }
 0x38e   : > { %980 = vrot.lane.b32.xlu0 %v1297_v29, %s1313_s14  ;;  %v1299_v30 = vpop.eup %1298 }
 0x391   : > { %v1301_v31 = vpop.eup %1300  ;;  %982 = vrot.lane.b32.xlu1 %v1299_v30, %s1313_s14 }
 0x392   : > { %984 = vrot.lane.b32.xlu0 %v1301_v31, %s1313_s14  ;;  %v1303_v32 = vpop.eup %1302 }
 0x395   : > { %986 = vrot.lane.b32.xlu1 %v1303_v32, %s1313_s14 }
 0x3f7   : > { %v975_v34 = vpop.permute.xlu0 %974 }
 0x3f8   : > { %v997_v35 = vmul.f32 %v975_v34, %v933_v33 }
 0x3fa   : > { %v1006_v36 = vsel %vm1004_vm5, %v997_v35, %v941_v53 }
 0x3fb   : > { %1015 = vst.msk [vmem:[%s1529_s18 + $0x8] sm:$0xff] %vm1013_vm6, %v1006_v36  ;;  %v979_v38 = vpop.permute.xlu1 %978  ;;  %v973_v39 = vpop.permute.xlu0 %972 }
 0x3fc   : > { %v999_v40 = vmul.f32 %v979_v38, %v935_v37  ;;  %v996_v41 = vmul.f32 %v973_v39, %v932_v7 }
 0x3fe   : > { %v1008_v42 = vsel %vm1004_vm5, %v999_v40, %v943_v61  ;;  %v1005_v43 = vsel %vm1004_vm5, %v996_v41, %v940_v54 }
 0x3ff   : > { %1017 = vst.msk [vmem:[%s1529_s18 + $0x18] sm:$0xff] %vm1013_vm6, %v1008_v42  ;;  %1014 = vst.msk [vmem:[%s1529_s18] sm:$0xff] %vm1013_vm6, %v1005_v43  ;;  %v977_v6 = vpop.permute.xlu1 %976 }
 0x400   : > { %v998_v45 = vmul.f32 %v977_v6, %v934_v9  ;;  %v981_v46 = vpop.permute.xlu0 %980 }
 0x401   : > { %v1000_v47 = vmul.f32 %v981_v46, %v936_v44 }
 0x402   : > { %v1007_v48 = vsel %vm1004_vm5, %v998_v45, %v942_v62 }
 0x403   : > { %1016 = vst.msk [vmem:[%s1529_s18 + $0x10] sm:$0xff] %vm1013_vm6, %v1007_v48  ;;  %v1009_v49 = vsel %vm1004_vm5, %v1000_v47, %v944_v14  ;;  %v983_v50 = vpop.permute.xlu1 %982 }
 0x404   : > { %1018 = vst.msk [vmem:[%s1529_s18 + $0x20] sm:$0xff] %vm1013_vm6, %v1009_v49  ;;  %v1001_v51 = vmul.f32 %v983_v50, %v937_v8  ;;  %v985_v52 = vpop.permute.xlu0 %984 }
 0x405   : > { %v1002_v53 = vmul.f32 %v985_v52, %v938_v10 }
 0x406   : > { %v1010_v54 = vsel %vm1004_vm5, %v1001_v51, %v945_v5 }
 0x407   : > { %1019 = vst.msk [vmem:[%s1529_s18 + $0x28] sm:$0xff] %vm1013_vm6, %v1010_v54  ;;  %v1011_v55 = vsel %vm1004_vm5, %v1002_v53, %v946_v22  ;;  %v987_v56 = vpop.permute.xlu1 %986 }
 0x408   : > { %1020 = vst.msk [vmem:[%s1529_s18 + $0x30] sm:$0xff] %vm1013_vm6, %v1011_v55  ;;  %v1003_v12 = vmul.f32 %v987_v56, %v939_v11 }
 0x40a   : > { %v1012_v57 = vsel %vm1004_vm5, %v1003_v12, %v947_v21 }
 0x40b   : > { %1021 = vst.msk [vmem:[%s1529_s18 + $0x38] sm:$0xff] %vm1013_vm6, %v1012_v57 }
 0x40c PF: > { %s19_s30 = sadd.s32 1, %s1310_s30  }
 0x40d   : > { %p16_p4 = scmp.ge.s32.totalorder %s19_s30, 4  }
 0x40f   :  { %18 = sbr.rel (!%p16_p4) target bundleno = 1 (0x1), region = 86 }

</bundles_post_ra>
